<compile_context>
chip_gen: v7x
topology: tpu7x:2x2x1
jax: 0.10.0
libtpu: 0.0.40
codegen_flags: <defaults>
</compile_context>

<pallas_src>
import jax
import jax.numpy as jnp
from jax.experimental import pallas as pl
from jax.experimental.pallas import tpu as pltpu


def _conv_ln_relu(x, bt, seg_len, w, b, gamma, beta):
    """Fused Conv1d(k=3, 'same') + LayerNorm + ReLU on flattened rows.

    x:              (bt*seg_len, C) f32 -- bt independent length-seg_len rows.
    w:              (3*C, H) bf16       -- taps [t-1, t, t+1] stacked on rows.
    b, gamma, beta: (1, H) f32.
    Returns (bt*seg_len, H) f32.
    """
    R, C = x.shape
    # Position of each row inside its own sequence (0..seg_len-1); built from
    # iota so no integer modulo is needed in the kernel.
    if bt == 1:
        pos = jax.lax.broadcasted_iota(jnp.int32, (R, C), 0)
    else:
        pos = jax.lax.broadcasted_iota(
            jnp.int32, (bt, seg_len, C), 1).reshape(R, C)
    # 'same' zero padding, kernel size 3: taps at t-1, t, t+1.
    # pltpu.roll requires non-negative shifts, so "-1" is expressed as R-1.
    x_prev = jnp.where(pos == 0, 0.0, pltpu.roll(x, shift=1, axis=0))
    x_next = jnp.where(pos == seg_len - 1, 0.0,
                       pltpu.roll(x, shift=R - 1, axis=0))
    # Fuse the 3 taps into a single K=3*C matmul; bf16 operands, f32 accum.
    x_cat = jnp.concatenate([x_prev, x, x_next], axis=-1).astype(jnp.bfloat16)
    y = jnp.dot(x_cat, w, preferred_element_type=jnp.float32) + b
    # LayerNorm over the hidden dim (single-pass stats, f32), eps=1e-5, affine.
    hdim = y.shape[-1]
    inv_h = 1.0 / hdim
    mean = jnp.sum(y, axis=-1, keepdims=True) * inv_h
    mean_sq = jnp.sum(y * y, axis=-1, keepdims=True) * inv_h
    var = mean_sq - mean * mean
    yn = (y - mean) * jax.lax.rsqrt(var + 1e-5)
    yn = yn * gamma + beta
    return jnp.maximum(yn, 0.0)  # ReLU


def duration_predictor_kernel(x_ref,
                              w1_ref, b1_ref, g1_ref, be1_ref,
                              w2_ref, b2_ref, g2_ref, be2_ref,
                              wl_ref, bl_ref,
                              out_ref):
    bt, seq, cin = x_ref.shape
    rows = bt * seq
    x = x_ref[...].reshape(rows, cin)                      # (rows, Cin) f32
    h = _conv_ln_relu(x, bt, seq,
                      w1_ref[...], b1_ref[...], g1_ref[...], be1_ref[...])
    h = _conv_ln_relu(h, bt, seq,
                      w2_ref[...], b2_ref[...], g2_ref[...], be2_ref[...])
    # Linear(H -> 1): VPU multiply + XLU row-reduce (keeps the store lane
    # dense); bias is a scalar read from SMEM.
    proj = jnp.sum(h * wl_ref[...], axis=-1) + bl_ref[0, 0]   # (rows,) f32
    out_ref[...] = proj.reshape(bt, 1, seq).astype(out_ref.dtype)


def duration_predictor(x, params, *, block_b=1):
    """x: (B, T, Cin) float32. Returns (B, T, 1) float32."""
    B, T, Cin = x.shape
    w1, b1, g1, be1, w2, b2, g2, be2, wl, bl = params
    H = w1.shape[-1]

    # Sequences per grid step.  Keep >=2 grid steps when possible (dual v7x
    # TensorCores) and keep T a sublane multiple for the free in-kernel
    # (block_b*T, C) reshape.
    bb = max(1, min(block_b, B))
    if T % 8 != 0:
        bb = 1
    while B % bb:
        bb -= 1

    # Weight prep (wrapper-side, layout plumbing only):
    #  - conv weights fused to (3*C, H) bf16 matmul operands
    #  - final Linear weight as a (1, H) f32 row for the VPU projection
    #  - final Linear bias as a (1, 1) f32 scalar for SMEM
    w1f = w1.reshape(3 * Cin, H).astype(jnp.bfloat16)
    w2f = w2.reshape(3 * H, H).astype(jnp.bfloat16)
    wlr = wl.reshape(1, H).astype(jnp.float32)
    blr = bl.reshape(1, 1).astype(jnp.float32)

    def full(arr):
        zeros = (0,) * arr.ndim
        return pl.BlockSpec(arr.shape, lambda i, _z=zeros: _z)

    out = pl.pallas_call(
        duration_predictor_kernel,
        out_shape=jax.ShapeDtypeStruct((B, 1, T), jnp.float32),
        grid_spec=pltpu.PrefetchScalarGridSpec(
            num_scalar_prefetch=0,
            grid=(B // bb,),
            in_specs=[
                pl.BlockSpec((bb, T, Cin), lambda i: (i, 0, 0)),
                full(w1f), full(b1), full(g1), full(be1),
                full(w2f), full(b2), full(g2), full(be2),
                full(wlr),
                pl.BlockSpec(memory_space=pltpu.MemorySpace.SMEM),
            ],
            out_specs=pl.BlockSpec((bb, 1, T), lambda i: (i, 0, 0)),
        ),
        compiler_params=pltpu.CompilerParams(
            dimension_semantics=("parallel",),
            vmem_limit_bytes=32 * 1024 * 1024,
        ),
    )(x, w1f, b1, g1, be1, w2f, b2, g2, be2, wlr, blr)

    # Lane-dense (B, 1, T) -> module's (B, T, 1); pure view reshape.
    return out.reshape(B, T, 1)


def init_params(key, input_size, hidden_size):
    ks = jax.random.split(key, 6)
    # Conv1d weights in PyTorch are (out, in, k); stored here as (k, in, out)
    # so each tap is a ready-to-use (in, out) matmul operand.
    w1 = jax.random.normal(ks[0], (3, input_size, hidden_size), jnp.float32) * 0.1
    b1 = jax.random.normal(ks[1], (1, hidden_size), jnp.float32) * 0.1
    g1 = jnp.ones((1, hidden_size), jnp.float32)
    be1 = jnp.zeros((1, hidden_size), jnp.float32)
    w2 = jax.random.normal(ks[2], (3, hidden_size, hidden_size), jnp.float32) * 0.1
    b2 = jax.random.normal(ks[3], (1, hidden_size), jnp.float32) * 0.1
    g2 = jnp.ones((1, hidden_size), jnp.float32)
    be2 = jnp.zeros((1, hidden_size), jnp.float32)
    # Linear(hidden, 1): PyTorch weight (1, hidden) -> stored transposed (hidden, 1).
    wl = jax.random.normal(ks[4], (hidden_size, 1), jnp.float32) * 0.1
    bl = jax.random.normal(ks[5], (1, 1), jnp.float32) * 0.1
    return (w1, b1, g1, be1, w2, b2, g2, be2, wl, bl)


def reference(x, params):
    """Pure-JAX f32 reference with identical semantics (for verification)."""
    w1, b1, g1, be1, w2, b2, g2, be2, wl, bl = params

    def block(x, w, b, gamma, beta):
        xp = jnp.pad(x, ((0, 0), (1, 1), (0, 0)))
        y = (jnp.einsum('bti,ih->bth', xp[:, :-2], w[0])
             + jnp.einsum('bti,ih->bth', xp[:, 1:-1], w[1])
             + jnp.einsum('bti,ih->bth', xp[:, 2:], w[2]) + b)
        mean = jnp.mean(y, axis=-1, keepdims=True)
        var = jnp.mean((y - mean) ** 2, axis=-1, keepdims=True)
        yn = (y - mean) / jnp.sqrt(var + 1e-5) * gamma + beta
        return jnp.maximum(yn, 0.0)

    h = block(x, w1, b1, g1, be1)
    h = block(h, w2, b2, g2, be2)
    return jnp.einsum('bth,ho->bto', h, wl) + bl


if __name__ == "__main__":
    B, T, INPUT_SIZE, HIDDEN_SIZE = 2, 16, 8, 32
    key = jax.random.PRNGKey(0)
    kx, kp = jax.random.split(key)
    x = jax.random.normal(kx, (B, T, INPUT_SIZE), jnp.float32)
    params = init_params(kp, INPUT_SIZE, HIDDEN_SIZE)

    out = jax.jit(duration_predictor)(x, params)
    out = jax.block_until_ready(out)

    ref = reference(x, params)
    assert out.shape == (B, T, 1)
    # Tolerance accounts for bf16 matmul operands (f32 accumulation) vs. the
    # pure-f32 reference.
    assert jnp.allclose(out, ref, rtol=5e-2, atol=5e-2), "mismatch vs reference"
    print("KERNEL_OK")
</pallas_src>

<mosaic_0001>
module attributes {stable_mosaic.version = 11 : i64} {
  func.func @duration_predictor_kernel(%arg0: i32, %arg1: memref<1x16x8xf32, #tpu.memory_space<vmem>>, %arg2: memref<24x32xbf16, #tpu.memory_space<vmem>>, %arg3: memref<1x32xf32, #tpu.memory_space<vmem>>, %arg4: memref<1x32xf32, #tpu.memory_space<vmem>>, %arg5: memref<1x32xf32, #tpu.memory_space<vmem>>, %arg6: memref<96x32xbf16, #tpu.memory_space<vmem>>, %arg7: memref<1x32xf32, #tpu.memory_space<vmem>>, %arg8: memref<1x32xf32, #tpu.memory_space<vmem>>, %arg9: memref<1x32xf32, #tpu.memory_space<vmem>>, %arg10: memref<1x32xf32, #tpu.memory_space<vmem>>, %arg11: memref<1x1xf32, #tpu.memory_space<smem>>, %arg12: memref<1x1x16xf32, #tpu.memory_space<vmem>>) attributes {dimension_semantics = [#tpu.dimension_semantics<parallel>], iteration_bounds = array<i64: 2>, scalar_prefetch = 0 : i64, scratch_operands = 0 : i64, tpu.core_type = #tpu.core_type<tc>, window_params = [{transform_indices = @transform_0, window_bounds = array<i64: 1, 16, 8>}, {pipeline_mode = #tpu.pipeline_mode<synchronous>, transform_indices = @transform_1, window_bounds = array<i64: 24, 32>}, {pipeline_mode = #tpu.pipeline_mode<synchronous>, transform_indices = @transform_2, window_bounds = array<i64: 1, 32>}, {pipeline_mode = #tpu.pipeline_mode<synchronous>, transform_indices = @transform_3, window_bounds = array<i64: 1, 32>}, {pipeline_mode = #tpu.pipeline_mode<synchronous>, transform_indices = @transform_4, window_bounds = array<i64: 1, 32>}, {pipeline_mode = #tpu.pipeline_mode<synchronous>, transform_indices = @transform_5, window_bounds = array<i64: 96, 32>}, {pipeline_mode = #tpu.pipeline_mode<synchronous>, transform_indices = @transform_6, window_bounds = array<i64: 1, 32>}, {pipeline_mode = #tpu.pipeline_mode<synchronous>, transform_indices = @transform_7, window_bounds = array<i64: 1, 32>}, {pipeline_mode = #tpu.pipeline_mode<synchronous>, transform_indices = @transform_8, window_bounds = array<i64: 1, 32>}, {pipeline_mode = #tpu.pipeline_mode<synchronous>, transform_indices = @transform_9, window_bounds = array<i64: 1, 32>}, {transform_indices = @transform_10, window_bounds = array<i64: 1, 1>}, {transform_indices = @transform_11, window_bounds = array<i64: 1, 1, 16>}]} {
    %c0 = arith.constant 0 : index
    %c0_0 = arith.constant 0 : index
    %c0_1 = arith.constant 0 : index
    %0 = vector.load %arg1[%c0, %c0_0, %c0_1] : memref<1x16x8xf32, #tpu.memory_space<vmem>>, vector<1x16x8xf32>
    %1 = vector.shape_cast %0 : vector<1x16x8xf32> to vector<16x8xf32>
    %c0_2 = arith.constant 0 : index
    %c0_3 = arith.constant 0 : index
    %2 = vector.load %arg2[%c0_2, %c0_3] : memref<24x32xbf16, #tpu.memory_space<vmem>>, vector<24x32xbf16>
    %c0_4 = arith.constant 0 : index
    %c0_5 = arith.constant 0 : index
    %3 = vector.load %arg3[%c0_4, %c0_5] : memref<1x32xf32, #tpu.memory_space<vmem>>, vector<1x32xf32>
    %c0_6 = arith.constant 0 : index
    %c0_7 = arith.constant 0 : index
    %4 = vector.load %arg4[%c0_6, %c0_7] : memref<1x32xf32, #tpu.memory_space<vmem>>, vector<1x32xf32>
    %c0_8 = arith.constant 0 : index
    %c0_9 = arith.constant 0 : index
    %5 = vector.load %arg5[%c0_8, %c0_9] : memref<1x32xf32, #tpu.memory_space<vmem>>, vector<1x32xf32>
    %6 = tpu.iota {dimensions = array<i32: 0>} : vector<16x8xi32>
    %c0_i32 = arith.constant 0 : i32
    %7 = vector.broadcast %c0_i32 : i32 to vector<16x8xi32>
    %8 = arith.cmpi eq, %6, %7 : vector<16x8xi32>
    %c1_i32 = arith.constant 1 : i32
    %9 = tpu.dynamic_rotate %1 by %c1_i32 dim 0 : vector<16x8xf32>, i32 -> vector<16x8xf32>
    %cst = arith.constant 0.000000e+00 : f32
    %10 = vector.broadcast %cst : f32 to vector<16x8xf32>
    %11 = arith.select %8, %10, %9 : vector<16x8xi1>, vector<16x8xf32>
    %c15_i32 = arith.constant 15 : i32
    %12 = vector.broadcast %c15_i32 : i32 to vector<16x8xi32>
    %13 = arith.cmpi eq, %6, %12 : vector<16x8xi32>
    %c15_i32_10 = arith.constant 15 : i32
    %14 = tpu.dynamic_rotate %1 by %c15_i32_10 dim 0 : vector<16x8xf32>, i32 -> vector<16x8xf32>
    %cst_11 = arith.constant 0.000000e+00 : f32
    %15 = vector.broadcast %cst_11 : f32 to vector<16x8xf32>
    %16 = arith.select %13, %15, %14 : vector<16x8xi1>, vector<16x8xf32>
    %17 = tpu.concatenate %11, %1, %16 in 1 : vector<16x8xf32>, vector<16x8xf32>, vector<16x8xf32> -> vector<16x24xf32>
    %18 = arith.truncf %17 : vector<16x24xf32> to vector<16x24xbf16>
    %cst_12 = arith.constant dense<0.000000e+00> : vector<16x32xf32>
    %19 = tpu.matmul %18, %2, %cst_12 {dimension_numbers = #tpu.dot_dimension_numbers<[1], [0], [0], [1], [0, 0, 1, 1], [], []>} : vector<16x24xbf16>, vector<24x32xbf16>, vector<16x32xf32> -> vector<16x32xf32>
    %20 = vector.broadcast %3 : vector<1x32xf32> to vector<16x32xf32>
    %21 = arith.addf %19, %20 : vector<16x32xf32>
    %cst_13 = arith.constant dense<0.000000e+00> : vector<16xf32>
    %22 = vector.multi_reduction <add>, %21, %cst_13 [1] : vector<16x32xf32> to vector<16xf32>
    %23 = vector.shape_cast %22 : vector<16xf32> to vector<16x1xf32>
    %cst_14 = arith.constant 3.125000e-02 : f32
    %24 = vector.broadcast %cst_14 : f32 to vector<16x1xf32>
    %25 = arith.mulf %23, %24 : vector<16x1xf32>
    %26 = arith.mulf %21, %21 : vector<16x32xf32>
    %cst_15 = arith.constant dense<0.000000e+00> : vector<16xf32>
    %27 = vector.multi_reduction <add>, %26, %cst_15 [1] : vector<16x32xf32> to vector<16xf32>
    %28 = vector.shape_cast %27 : vector<16xf32> to vector<16x1xf32>
    %cst_16 = arith.constant 3.125000e-02 : f32
    %29 = vector.broadcast %cst_16 : f32 to vector<16x1xf32>
    %30 = arith.mulf %28, %29 : vector<16x1xf32>
    %31 = arith.mulf %25, %25 : vector<16x1xf32>
    %32 = arith.subf %30, %31 : vector<16x1xf32>
    %33 = vector.broadcast %25 : vector<16x1xf32> to vector<16x32xf32>
    %34 = arith.subf %21, %33 : vector<16x32xf32>
    %cst_17 = arith.constant 9.99999974E-6 : f32
    %35 = vector.broadcast %cst_17 : f32 to vector<16x1xf32>
    %36 = arith.addf %32, %35 : vector<16x1xf32>
    %37 = math.rsqrt %36 : vector<16x1xf32>
    %38 = vector.broadcast %37 : vector<16x1xf32> to vector<16x32xf32>
    %39 = arith.mulf %34, %38 : vector<16x32xf32>
    %40 = vector.broadcast %4 : vector<1x32xf32> to vector<16x32xf32>
    %41 = arith.mulf %39, %40 : vector<16x32xf32>
    %42 = vector.broadcast %5 : vector<1x32xf32> to vector<16x32xf32>
    %43 = arith.addf %41, %42 : vector<16x32xf32>
    %cst_18 = arith.constant 0.000000e+00 : f32
    %44 = vector.broadcast %cst_18 : f32 to vector<16x32xf32>
    %45 = arith.maximumf %43, %44 : vector<16x32xf32>
    %c0_19 = arith.constant 0 : index
    %c0_20 = arith.constant 0 : index
    %46 = vector.load %arg6[%c0_19, %c0_20] : memref<96x32xbf16, #tpu.memory_space<vmem>>, vector<96x32xbf16>
    %c0_21 = arith.constant 0 : index
    %c0_22 = arith.constant 0 : index
    %47 = vector.load %arg7[%c0_21, %c0_22] : memref<1x32xf32, #tpu.memory_space<vmem>>, vector<1x32xf32>
    %c0_23 = arith.constant 0 : index
    %c0_24 = arith.constant 0 : index
    %48 = vector.load %arg8[%c0_23, %c0_24] : memref<1x32xf32, #tpu.memory_space<vmem>>, vector<1x32xf32>
    %c0_25 = arith.constant 0 : index
    %c0_26 = arith.constant 0 : index
    %49 = vector.load %arg9[%c0_25, %c0_26] : memref<1x32xf32, #tpu.memory_space<vmem>>, vector<1x32xf32>
    %50 = tpu.iota {dimensions = array<i32: 0>} : vector<16x32xi32>
    %c0_i32_27 = arith.constant 0 : i32
    %51 = vector.broadcast %c0_i32_27 : i32 to vector<16x32xi32>
    %52 = arith.cmpi eq, %50, %51 : vector<16x32xi32>
    %c1_i32_28 = arith.constant 1 : i32
    %53 = tpu.dynamic_rotate %45 by %c1_i32_28 dim 0 : vector<16x32xf32>, i32 -> vector<16x32xf32>
    %cst_29 = arith.constant 0.000000e+00 : f32
    %54 = vector.broadcast %cst_29 : f32 to vector<16x32xf32>
    %55 = arith.select %52, %54, %53 : vector<16x32xi1>, vector<16x32xf32>
    %c15_i32_30 = arith.constant 15 : i32
    %56 = vector.broadcast %c15_i32_30 : i32 to vector<16x32xi32>
    %57 = arith.cmpi eq, %50, %56 : vector<16x32xi32>
    %c15_i32_31 = arith.constant 15 : i32
    %58 = tpu.dynamic_rotate %45 by %c15_i32_31 dim 0 : vector<16x32xf32>, i32 -> vector<16x32xf32>
    %cst_32 = arith.constant 0.000000e+00 : f32
    %59 = vector.broadcast %cst_32 : f32 to vector<16x32xf32>
    %60 = arith.select %57, %59, %58 : vector<16x32xi1>, vector<16x32xf32>
    %61 = tpu.concatenate %55, %45, %60 in 1 : vector<16x32xf32>, vector<16x32xf32>, vector<16x32xf32> -> vector<16x96xf32>
    %62 = arith.truncf %61 : vector<16x96xf32> to vector<16x96xbf16>
    %cst_33 = arith.constant dense<0.000000e+00> : vector<16x32xf32>
    %63 = tpu.matmul %62, %46, %cst_33 {dimension_numbers = #tpu.dot_dimension_numbers<[1], [0], [0], [1], [0, 0, 1, 1], [], []>} : vector<16x96xbf16>, vector<96x32xbf16>, vector<16x32xf32> -> vector<16x32xf32>
    %64 = vector.broadcast %47 : vector<1x32xf32> to vector<16x32xf32>
    %65 = arith.addf %63, %64 : vector<16x32xf32>
    %cst_34 = arith.constant dense<0.000000e+00> : vector<16xf32>
    %66 = vector.multi_reduction <add>, %65, %cst_34 [1] : vector<16x32xf32> to vector<16xf32>
    %67 = vector.shape_cast %66 : vector<16xf32> to vector<16x1xf32>
    %cst_35 = arith.constant 3.125000e-02 : f32
    %68 = vector.broadcast %cst_35 : f32 to vector<16x1xf32>
    %69 = arith.mulf %67, %68 : vector<16x1xf32>
    %70 = arith.mulf %65, %65 : vector<16x32xf32>
    %cst_36 = arith.constant dense<0.000000e+00> : vector<16xf32>
    %71 = vector.multi_reduction <add>, %70, %cst_36 [1] : vector<16x32xf32> to vector<16xf32>
    %72 = vector.shape_cast %71 : vector<16xf32> to vector<16x1xf32>
    %cst_37 = arith.constant 3.125000e-02 : f32
    %73 = vector.broadcast %cst_37 : f32 to vector<16x1xf32>
    %74 = arith.mulf %72, %73 : vector<16x1xf32>
    %75 = arith.mulf %69, %69 : vector<16x1xf32>
    %76 = arith.subf %74, %75 : vector<16x1xf32>
    %77 = vector.broadcast %69 : vector<16x1xf32> to vector<16x32xf32>
    %78 = arith.subf %65, %77 : vector<16x32xf32>
    %cst_38 = arith.constant 9.99999974E-6 : f32
    %79 = vector.broadcast %cst_38 : f32 to vector<16x1xf32>
    %80 = arith.addf %76, %79 : vector<16x1xf32>
    %81 = math.rsqrt %80 : vector<16x1xf32>
    %82 = vector.broadcast %81 : vector<16x1xf32> to vector<16x32xf32>
    %83 = arith.mulf %78, %82 : vector<16x32xf32>
    %84 = vector.broadcast %48 : vector<1x32xf32> to vector<16x32xf32>
    %85 = arith.mulf %83, %84 : vector<16x32xf32>
    %86 = vector.broadcast %49 : vector<1x32xf32> to vector<16x32xf32>
    %87 = arith.addf %85, %86 : vector<16x32xf32>
    %cst_39 = arith.constant 0.000000e+00 : f32
    %88 = vector.broadcast %cst_39 : f32 to vector<16x32xf32>
    %89 = arith.maximumf %87, %88 : vector<16x32xf32>
    %c0_40 = arith.constant 0 : index
    %c0_41 = arith.constant 0 : index
    %90 = vector.load %arg10[%c0_40, %c0_41] : memref<1x32xf32, #tpu.memory_space<vmem>>, vector<1x32xf32>
    %91 = vector.broadcast %90 : vector<1x32xf32> to vector<16x32xf32>
    %92 = arith.mulf %89, %91 : vector<16x32xf32>
    %cst_42 = arith.constant dense<0.000000e+00> : vector<16xf32>
    %93 = vector.multi_reduction <add>, %92, %cst_42 [1] : vector<16x32xf32> to vector<16xf32>
    %c0_43 = arith.constant 0 : index
    %c0_44 = arith.constant 0 : index
    %94 = memref.load %arg11[%c0_43, %c0_44] : memref<1x1xf32, #tpu.memory_space<smem>>
    %95 = vector.broadcast %94 : f32 to vector<16xf32>
    %96 = arith.addf %93, %95 : vector<16xf32>
    %97 = vector.shape_cast %96 : vector<16xf32> to vector<1x1x16xf32>
    %c0_45 = arith.constant 0 : index
    %c0_46 = arith.constant 0 : index
    %c0_47 = arith.constant 0 : index
    %98 = vector.load %arg12[%c0_45, %c0_46, %c0_47] : memref<1x1x16xf32, #tpu.memory_space<vmem>>, vector<1x1x16xf32>
    tpu.vector_store %arg12[%c0_45, %c0_46, %c0_47], %97 {strides = array<i32>} : memref<1x1x16xf32, #tpu.memory_space<vmem>>, vector<1x1x16xf32>,
    return
  }
  func.func @transform_0(%arg0: i32) -> (i32, i32, i32) {
    %c0_i32 = arith.constant 0 : i32
    %c0_i32_0 = arith.constant 0 : i32
    %c0_i32_1 = arith.constant 0 : i32
    return %arg0, %c0_i32, %c0_i32_0 : i32, i32, i32
  }
  func.func @transform_1(%arg0: i32) -> (i32, i32) {
    %c0_i32 = arith.constant 0 : i32
    %c0_i32_0 = arith.constant 0 : i32
    %c0_i32_1 = arith.constant 0 : i32
    return %c0_i32, %c0_i32_0 : i32, i32
  }
  func.func @transform_2(%arg0: i32) -> (i32, i32) {
    %c0_i32 = arith.constant 0 : i32
    %c0_i32_0 = arith.constant 0 : i32
    %c0_i32_1 = arith.constant 0 : i32
    return %c0_i32, %c0_i32_0 : i32, i32
  }
  func.func @transform_3(%arg0: i32) -> (i32, i32) {
    %c0_i32 = arith.constant 0 : i32
    %c0_i32_0 = arith.constant 0 : i32
    %c0_i32_1 = arith.constant 0 : i32
    return %c0_i32, %c0_i32_0 : i32, i32
  }
  func.func @transform_4(%arg0: i32) -> (i32, i32) {
    %c0_i32 = arith.constant 0 : i32
    %c0_i32_0 = arith.constant 0 : i32
    %c0_i32_1 = arith.constant 0 : i32
    return %c0_i32, %c0_i32_0 : i32, i32
  }
  func.func @transform_5(%arg0: i32) -> (i32, i32) {
    %c0_i32 = arith.constant 0 : i32
    %c0_i32_0 = arith.constant 0 : i32
    %c0_i32_1 = arith.constant 0 : i32
    return %c0_i32, %c0_i32_0 : i32, i32
  }
  func.func @transform_6(%arg0: i32) -> (i32, i32) {
    %c0_i32 = arith.constant 0 : i32
    %c0_i32_0 = arith.constant 0 : i32
    %c0_i32_1 = arith.constant 0 : i32
    return %c0_i32, %c0_i32_0 : i32, i32
  }
  func.func @transform_7(%arg0: i32) -> (i32, i32) {
    %c0_i32 = arith.constant 0 : i32
    %c0_i32_0 = arith.constant 0 : i32
    %c0_i32_1 = arith.constant 0 : i32
    return %c0_i32, %c0_i32_0 : i32, i32
  }
  func.func @transform_8(%arg0: i32) -> (i32, i32) {
    %c0_i32 = arith.constant 0 : i32
    %c0_i32_0 = arith.constant 0 : i32
    %c0_i32_1 = arith.constant 0 : i32
    return %c0_i32, %c0_i32_0 : i32, i32
  }
  func.func @transform_9(%arg0: i32) -> (i32, i32) {
    %c0_i32 = arith.constant 0 : i32
    %c0_i32_0 = arith.constant 0 : i32
    %c0_i32_1 = arith.constant 0 : i32
    return %c0_i32, %c0_i32_0 : i32, i32
  }
  func.func @transform_10(%arg0: i32) -> (i32, i32) {
    %c0_i32 = arith.constant 0 : i32
    %c0_i32_0 = arith.constant 0 : i32
    %c0_i32_1 = arith.constant 0 : i32
    return %c0_i32, %c0_i32_0 : i32, i32
  }
  func.func @transform_11(%arg0: i32) -> (i32, i32, i32) {
    %c0_i32 = arith.constant 0 : i32
    %c0_i32_0 = arith.constant 0 : i32
    %c0_i32_1 = arith.constant 0 : i32
    return %arg0, %c0_i32, %c0_i32_0 : i32, i32, i32
  }
}

</mosaic_0001>

<bundles_post_ra>
// kernel: duration_predictor.1
= control target key start
LH: loop header
LB: loop body
LE: loop exit
PB: predicated region body
PF: predicated region fallthrough
CT: control target
= control target key end

     0   :  { %s1320_s0 = inlined_call_operand.vmem [shape: f32[2,16,8], index: 0, kind: input, shape index: {}]   ;;  %s1321_s1 = inlined_call_operand.vmem [shape: bf16[24,32], index: 1, kind: input, shape index: {}]   ;;  %s1322_s2 = inlined_call_operand.vmem [shape: f32[1,32], index: 2, kind: input, shape index: {}]   ;;  %s1323_s3 = inlined_call_operand.vmem [shape: f32[1,32], index: 3, kind: input, shape index: {}]   ;;  %s1324_s4 = inlined_call_operand.vmem [shape: f32[1,32], index: 4, kind: input, shape index: {}]   ;;  %s1325_s5 = inlined_call_operand.vmem [shape: bf16[96,32], index: 5, kind: input, shape index: {}]   ;;  %s1326_s6 = inlined_call_operand.vmem [shape: f32[1,32], index: 6, kind: input, shape index: {}]   ;;  %s1327_s7 = inlined_call_operand.vmem [shape: f32[1,32], index: 7, kind: input, shape index: {}]   ;;  %s1328_s8 = inlined_call_operand.vmem [shape: f32[1,32], index: 8, kind: input, shape index: {}]   ;;  %s1329_s9 = inlined_call_operand.vmem [shape: f32[1,32], index: 9, kind: input, shape index: {}]   ;;  %s1330_s10 = inlined_call_operand.<no memory space> [shape: f32[1,1], index: 10, kind: input, shape index: {}]   ;;  %s1331_s11 = inlined_call_operand.hbm [shape: f32[2,1,16], index: 11, kind: output, shape index: {}]  }
   0x1   :  { %16 = sst [smem:[#allocation2]] %s1330_s10 }
   0x2   :  { %17 = vsyncpa [#allocation4], 0 }
   0x3   :  { %19 = vsyncpa [#allocation4 + $0x1], 0  ;;  %s1116_s19 = smov 0   ;;  %s1118_s20 = smov 0  }
   0x4   :  { %s1120_s21 = smov 0   ;;  %s1122_s22 = smov 0  }
   0x5 LB: > { %s1137_s10 = sadd.s32 4294967295, %s1044_s22   ;;  %s840_s23 = sadd.s32 4294967294, %s1044_s22   ;;  %s1044_s22 = sphi %s1122_s22, %s1337_s22   ;;  %s1040_s21 = sphi %s1120_s21, %s1336_s21   ;;  %s1036_s20 = sphi %s1118_s20, %s1335_s20   ;;  %s1032_s19 = sphi %s1116_s19, %s1334_s19  }
   0x6   : > { %s1141_s24 = sadd.s32 1, %s1044_s22   ;;  %s268_s25 = sadd.s32 1, %s1040_s21 }
   0x7   : > { %s265_s26 = ssub.s32 %s1044_s22, %s1141_s24  ;;  %p278_p0 = scmp.ne.s32.totalorder %s1040_s21, %s1036_s20 }
   0x8   : > { %p266_p1 = scmp.eq.s32.totalorder %s265_s26, 0  ;;  %p279_p2 = scmp.eq.s32.totalorder %s1137_s10, 1 }
   0x9   : > { %p284_p3 = scmp.ne.s32.totalorder %s1036_s20, %s1032_s19  ;;  %p285_p4 = scmp.eq.s32.totalorder %s840_s23, 1 }
   0xa   : > { %s1152_s27 = scalar_select %p266_p1, %s1040_s21, %s268_s25  }
   0xb   : > { %p1154_p5 = por %p279_p2, %p278_p0  ;;  %p1158_p6 = por %p285_p4, %p284_p3 }
   0xc   : > { %p843_p7 = scmp.ge.s32.totalorder %s1044_s22, 1  ;;  %p341_p8 = scmp.lt.s32.totalorder %s1044_s22, 3 }
   0xe   : > { %p342_p9 = pnand %p843_p7, %p341_p8 }
   0xf   : > { %p380_p10 = scmp.lt.s32.totalorder (!%p342_p9), %s1137_s10, 1  ;;  %v394_v0 = vlaneseq (!%p342_p9)  ;;  %v1046_v1 = vmov (!%p342_p9), 0.0   ;;  %v966_v2 = vld [vmem:[%s1321_s1] sm:$0xff] (!%p342_p9)   ;;  %vm457_vm0 = vcmask (!%p342_p9), 1043456   ;;  %v967_v4 = vld [vmem:[%s1321_s1 + $0x8] ss:$0 sps:$4 sm:$0xff] (!%p342_p9)  }
  0x10   : > { %345 = sbr.rel (%p342_p9) target bundleno = 1227 (0x4cb), region = 64  ;;  %877 = vmatprep.subr.bf16.mxu0 (!%p342_p9), %v1046_v1  ;;  %885 = vmatprep.subr.bf16.mxu1 (!%p342_p9), %v1046_v1  ;;  %v459_v6 = vsel (!%p342_p9), %vm457_vm0, %v967_v4, 0  ;;  %vm1047_vm3 = vmmov (!%p342_p9), 0   ;;  %s1048_s25 = smov (!%p342_p9), 8   ;;  %vm431_vm6 = vcmask (!%p342_p9), 64512   ;;  %vm434_vm7 = vcmask (!%p342_p9), 130048  }
  0x11   : > { %v1172_v3 = vshrl.u32 (!%p342_p9), %v394_v0, 7  ;;  %878 = vmatpush3.bf16.msra.mxu0 (!%p342_p9), %v966_v2  ;;  %881 = vmatprep.mubr.msk.bf16.mxu0 (!%p342_p9), %vm1047_vm3, %v1046_v1  ;;  %s1049_s26 = smov (!%p342_p9), 16   ;;  %vm453_vm8 = vcmask (!%p342_p9), 195584   ;;  %v846_v32 = vld [vmem:[%s1322_s2] ss:$0 sm:$0xff] (!%p342_p9)  ;;  %vm502_vm9 = vcmask (!%p342_p9), 261120  }
  0x12   : > { %879 = vmatprep.subr.bf16.mxu0 (!%p342_p9), %v1046_v1  ;;  %897 = vmatprep.mubr.msk.bf16.mxu1 (!%p342_p9), %vm1047_vm3, %v1046_v1  ;;  %v968_v45 = vld [vmem:[%s1325_s5] sm:$0xff] (!%p342_p9)   ;;  %v969_v46 = vld [vmem:[%s1325_s5 + $0x8] sm:$0xff] (!%p342_p9)   ;;  %v970_v47 = vld [vmem:[%s1325_s5 + $0x10] sm:$0xff] (!%p342_p9)   ;;  %s1050_s18 = smov (!%p342_p9), 32   ;;  %vm596_vm10 = vcmask (!%p342_p9), 523264   ;;  %vm642_vm11 = vcmask (!%p342_p9), 785408  }
  0x13   : > { %v1178_v5 = vadd.s32 (!%p342_p9), 8, %v1172_v3  ;;  %vm410_vm1 = vcmp.lt.s32.totalorder (!%p342_p9), %v1172_v3, 7  ;;  %vm401_vm2 = vcmp.lt.s32.totalorder (!%p342_p9), %v1172_v3, 1  ;;  %vm397_vm5 = vcmp.eq.s32.totalorder (!%p342_p9), %v1172_v3, 0  ;;  %886 = vmatpush3.bf16.msra.mxu1 (!%p342_p9), %v968_v45  ;;  %v971_v48 = vld [vmem:[%s1325_s5 + $0x18] sm:$0xff] (!%p342_p9)   ;;  %s750_s17 = sld [smem:[#allocation2]] (!%p342_p9) }
  0x14   : > { %887 = vmatprep.subr.bf16.mxu1 (!%p342_p9), %v1046_v1  ;;  %v850_v4 = vld [vmem:[%s1323_s3] ss:$0 sm:$0xff] (!%p342_p9)  ;;  %vm767_vm12 = vcmask (!%p342_p9), 130112   ;;  %vm770_vm13 = vcmask (!%p342_p9), 122880   ;;  %s1052_s15 = smov (!%p342_p9), [#allocation3]  }
  0x15   : > { %880 = vmatpush3.bf16.msra.mxu0 (!%p342_p9), %v459_v6  ;;  %vm407_vm4 = vcmp.eq.s32.totalorder (!%p342_p9), %v1178_v5, 15 }
  0x17   : > { %s381_s13 = scalar_select %p380_p10, %s1137_s10, 1  ;;  %888 = vmatpush3.bf16.msra.mxu1 %v969_v46 }
  0x18   : > { %889 = vmatprep.subr.bf16.mxu1 %v1046_v1 }
  0x19   : > { %s866_s16 = sshll.u32 %s381_s13, 4 }
  0x1a   : > { %s384_s23 = scalar_lea.vmem %s1320_s0, %s866_s16  ;;  %s986_s16 = sshll.u32 %s1052_s15, 4  ;;  %s987_s16 = int_to_ptr.vmem [resolvable:$false] %s986_s16 }
  0x1b   : > { %v386_v7 = vld [vmem:[%s384_s23] sm:$0xff]  ;;  %v387_v8 = vld [vmem:[%s384_s23 + $0x8] sm:$0xff]  ;;  %890 = vmatpush3.bf16.msra.mxu1 %v970_v47  ;;  %s1051_s23 = smov 64  }
  0x1c   : > { %v400_v9 = vrot.slane %v387_v8, 7  ;;  %v409_v10 = vrot.slane %v387_v8, 1  ;;  %v946_v11 = vpack.i.bf16 %v387_v8, %v386_v7  ;;  %v399_v12 = vrot.slane %v386_v7, 7  ;;  %891 = vmatprep.subr.bf16.mxu1 %v1046_v1 }
  0x1d   : > { %v408_v13 = vrot.slane %v386_v7, 1  ;;  %v851_v7 = vld [vmem:[%s1324_s4] ss:$0 sm:$0xff] }
  0x1e   : > { %947 = vrot.lane.b32.xlu0 %v946_v11, %s1048_s25  ;;  %v402_v14 = vsel %vm401_vm2, %v399_v12, %v400_v9  ;;  %v403_v15 = vsel %vm401_vm2, %v400_v9, %v399_v12  ;;  %v972_v9 = vld [vmem:[%s1325_s5 + $0x20] sm:$0xff]  }
  0x1f   : > { %v411_v16 = vsel %vm410_vm1, %v408_v13, %v409_v10  ;;  %v412_v17 = vsel %vm410_vm1, %v409_v10, %v408_v13  ;;  %v404_v23 = vsel %vm397_vm5, 0.0, %v403_v15  ;;  %892 = vmatpush3.bf16.msra.mxu1 %v971_v48 }
  0x20   : > { %v414_v18 = vsel %vm407_vm4, 0.0, %v412_v17  ;;  %893 = vmatprep.subr.bf16.mxu1 %v1046_v1 }
  0x21   : > { %v951_v19 = vpack.i.bf16 %v414_v18, %v411_v16 }
  0x23   : > { %952 = vrot.lane.b32.xlu0 %v951_v19, %s1049_s26  ;;  %894 = vmatpush3.bf16.msra.mxu1 %v972_v9  ;;  %v860_v9 = vld [vmem:[%s1327_s7] ss:$0 sm:$0xff] }
  0x24   : > { %895 = vmatprep.subr.bf16.mxu1 %v1046_v1 }
  0x90   : > { %v948_v20 = vpop.permute.xlu0 %947 }
  0x91   : > { %v950_v21 = vunpack.i.h.bf16 %v948_v20  ;;  %v949_v22 = vunpack.i.l.bf16 %v948_v20 }
  0x93   : > { %v432_v27 = vsel %vm431_vm6, %v404_v23, %v949_v22  ;;  %v433_v28 = vsel %vm431_vm6, %v402_v14, %v950_v21  ;;  %v973_v14 = vld [vmem:[%s1325_s5 + $0x28] sm:$0xff]  }
  0x94   : > { %896 = vmatpush3.bf16.msra.mxu1 %v973_v14 }
  0x95   : > { %v953_v24 = vpop.permute.xlu0 %952 }
  0x96   : > { %v955_v25 = vunpack.i.h.bf16 %v953_v24  ;;  %v954_v26 = vunpack.i.l.bf16 %v953_v24 }
  0x98   : > { %v435_v29 = vsel %vm434_vm7, %v432_v27, %v954_v26  ;;  %v436_v30 = vsel %vm434_vm7, %v433_v28, %v955_v25 }
  0x99   : > { %v437_v31 = vpack.c.bf16 %v436_v30, %v435_v29 }
  0x9b   : > { %882 = vmatmul.mubr.msk.bf16.vlgmr.msra.gmra.mrb[0].mxu0 %vm453_vm8, %v437_v31 }
 0x16e   : > { %v495_v33 = vpop.f32.mrb[0].mxu0 }
 0x16f   : > { %v496_v34 = vadd.f32 %v846_v32, %v495_v33  ;;  %v883_v35 = vpop.f32.mrb[1].mxu0 }
 0x170   : > { %v498_v36 = vpop.f32.mrb[2].mxu0 }
 0x171   : > { %v499_v37 = vadd.f32 %v846_v32, %v498_v36  ;;  %v884_v38 = vpop.f32.mrb[3].mxu0  ;;  %v503_v39 = vsel %vm502_vm9, %v496_v34, 0.0  ;;  %v511_v40 = vmul.f32 %v496_v34, %v496_v34 }
 0x172   : > { %504 = vadd.xlane.f32.xlu1 %v503_v39 }
 0x173   : > { %v513_v41 = vsel %vm502_vm9, %v511_v40, 0.0  ;;  %v506_v42 = vsel %vm502_vm9, %v499_v37, 0.0  ;;  %v512_v43 = vmul.f32 %v499_v37, %v499_v37  ;;  %v852_v40 = vld [vmem:[%s1326_s6] ss:$0 sm:$0xff] }
 0x174   : > { %514 = vadd.xlane.f32.xlu0 %v513_v41 }
 0x175   : > { %v516_v44 = vsel %vm502_vm9, %v512_v43, 0.0 }
 0x176   : > { %507 = vadd.xlane.f32.xlu1 %v506_v42 }
 0x17a   : > { %517 = vadd.xlane.f32.xlu1 %v516_v44 }
 0x1ff   : > { %v505_v49 = vpop.xlane.xlu1 %504 }
 0x200   : > { %v509_v50 = vmul.f32 0.03125, %v505_v49 }
 0x201   : > { %v515_v51 = vpop.xlane.xlu0 %514 }
 0x202   : > { %v521_v52 = vmul.f32 %v509_v50, %v509_v50  ;;  %v519_v53 = vmul.f32 0.03125, %v515_v51  ;;  %v525_v63 = vsub.f32 %v496_v34, %v509_v50 }
 0x203   : > { %v508_v54 = vpop.xlane.xlu1 %507 }
 0x204   : > { %v523_v55 = vsub.f32 %v519_v53, %v521_v52  ;;  %v510_v56 = vmul.f32 0.03125, %v508_v54 }
 0x206   : > { %v527_v57 = vadd.f32 1e-05, %v523_v55  ;;  %v522_v59 = vmul.f32 %v510_v56, %v510_v56  ;;  %v526_v10 = vsub.f32 %v499_v37, %v510_v56 }
 0x207   : > { %v518_v58 = vpop.xlane.xlu1 %517 }
 0x208   : > { %974 = vrsqrt.f32 %v527_v57  ;;  %v520_v60 = vmul.f32 0.03125, %v518_v58 }
 0x20a   : > { %v524_v61 = vsub.f32 %v520_v60, %v522_v59 }
 0x20c   : > { %v528_v62 = vadd.f32 1e-05, %v524_v61 }
 0x20e   : > { %976 = vrsqrt.f32 %v528_v62 }
 0x212   : > { %v975_v2 = vpop.eup %974 }
 0x213   : > { %v531_v6 = vmul.f32 %v975_v2, %v525_v63 }
 0x215   : > { %v539_v8 = vmul.f32 %v850_v4, %v531_v6 }
 0x217   : > { %v547_v12 = vadd.f32 %v851_v7, %v539_v8 }
 0x218   : > { %v977_v11 = vpop.eup %976 }
 0x219   : > { %v532_v13 = vmul.f32 %v977_v11, %v526_v10  ;;  %v549_v16 = vmax.f32 %v547_v12, 0.0  ;;  %v861_v11 = vld [vmem:[%s1328_s8] ss:$0 sm:$0xff] }
 0x21b   : > { %v540_v15 = vmul.f32 %v850_v4, %v532_v13  ;;  %v572_v19 = vrot.slane %v549_v16, 1  ;;  %v566_v22 = vrot.slane %v549_v16, 7 }
 0x21d   : > { %v548_v17 = vadd.f32 %v851_v7, %v540_v15 }
 0x21f   : > { %v550_v18 = vmax.f32 %v548_v17, 0.0  ;;  %v862_v17 = vld [vmem:[%s1329_s9] ss:$0 sm:$0xff] }
 0x221   : > { %v956_v20 = vpack.i.bf16 %v550_v18, %v549_v16  ;;  %v573_v21 = vrot.slane %v550_v18, 1  ;;  %v567_v23 = vrot.slane %v550_v18, 7 }
 0x223   : > { %957 = vrot.lane.b32.xlu1 %v956_v20, %s1050_s18  ;;  %v574_v24 = vsel %vm410_vm1, %v572_v19, %v573_v21  ;;  %v575_v1 = vsel %vm410_vm1, %v573_v21, %v572_v19  ;;  %v568_v25 = vsel %vm401_vm2, %v566_v22, %v567_v23  ;;  %v569_v26 = vsel %vm401_vm2, %v567_v23, %v566_v22  ;;  %s378_s18 = sand.u32 1, %s1036_s20  }
 0x224   : > { %v577_v27 = vsel %vm407_vm4, 0.0, %v575_v1  ;;  %v570_v33 = vsel %vm397_vm5, 0.0, %v569_v26  ;;  %s379_s25 = scalar_lea.vmem [#allocation3], %s378_s18  ;;  %s773_s14 = scalar_lea.sflag [#allocation4], %s378_s18 }
 0x225   : > { %v961_v28 = vpack.i.bf16 %v577_v27, %v574_v24  ;;  %v751_v27 = vstv %s750_s17  ;;  %s785_s26 = sshll.u32 %s379_s25, 4  ;;  %s988_s17 = scalar_lea.vmem %s987_s16, 32  ;;  %s1280_s26 = int_to_ptr.vmem [resolvable:$true] %s785_s26 }
 0x226   : > { %p989_p0 = scmp.lt.s32.totalorder %s1280_s26, %s987_s16 }
 0x227   : > { %962 = vrot.lane.b32.xlu1 %v961_v28, %s1051_s23  ;;  %s863_s23 = sshll.u32 %s1137_s10, 4  ;;  %s982_s10 = scalar_lea.vmem %s1280_s26, 16 }
 0x228   : > { %s1278_s13 = scalar_lea.hbm %s1331_s11, %s863_s23  ;;  %p983_p11 = scmp.ne.s32.totalorder %s1280_s26, %s982_s10 }
 0x229   : > { %p990_p1 = scmp.lt.s32.totalorder %s988_s17, %s982_s10 }
 0x22a   : > { %p984_p12 = pnand %p983_p11, %p1154_p5 }
 0x22b   : > { %p991_p2 = por %p990_p1, %p989_p0 }
 0x22c   : > { %p985_p13 = pneg %p984_p12 }
 0x22e   : > { %p992_p3 = pnand %p991_p2, %p985_p13 }
 0x295   : > { %v958_v29 = vpop.permute.xlu1 %957 }
 0x296   : > { %v960_v30 = vunpack.i.h.bf16 %v958_v29  ;;  %v959_v31 = vunpack.i.l.bf16 %v958_v29 }
 0x298   : > { %v594_v36 = vsel %vm502_vm9, %v570_v33, %v959_v31  ;;  %v595_v37 = vsel %vm502_vm9, %v568_v25, %v960_v30  ;;  %v757_v25 = vand.u32 127, %v394_v0 }
 0x299   : > { %v963_v32 = vpop.permute.xlu1 %962 }
 0x29a   : > { %v965_v34 = vunpack.i.h.bf16 %v963_v32  ;;  %v964_v35 = vunpack.i.l.bf16 %v963_v32  ;;  %v762_v26 = vadd.s32 4294967288, %v757_v25  ;;  %v760_v29 = vsub.s32 %v757_v25, %v1172_v3 }
 0x29c   : > { %v597_v38 = vsel %vm596_vm10, %v594_v36, %v964_v35  ;;  %v598_v5 = vsel %vm596_vm10, %v595_v37, %v965_v34  ;;  %v765_v31 = vsub.s32 %v762_v26, %v1172_v3 }
 0x29d   : > { %v599_v39 = vpack.c.bf16 %v598_v5, %v597_v38 }
 0x29f   : > { %898 = vmatmul.mubr.msk.bf16.vlgmr.msra.gmra.mrb[0].mxu1 %vm642_vm11, %v599_v39 }
 0x372   : > { %v680_v41 = vpop.f32.mrb[0].mxu1 }
 0x373   : > { %v681_v42 = vadd.f32 %v852_v40, %v680_v41  ;;  %v899_v43 = vpop.f32.mrb[1].mxu1 }
 0x374   : > { %v683_v44 = vpop.f32.mrb[2].mxu1 }
 0x375   : > { %v684_v45 = vadd.f32 %v852_v40, %v683_v44  ;;  %v900_v46 = vpop.f32.mrb[3].mxu1  ;;  %v687_v47 = vsel %vm502_vm9, %v681_v42, 0.0  ;;  %v695_v49 = vmul.f32 %v681_v42, %v681_v42 }
 0x376   : > { %688 = vadd.xlane.f32.xlu1 %v687_v47 }
 0x377   : > { %v690_v48 = vsel %vm502_vm9, %v684_v45, 0.0  ;;  %v697_v50 = vsel %vm502_vm9, %v695_v49, 0.0  ;;  %v696_v51 = vmul.f32 %v684_v45, %v684_v45 }
 0x378   : > { %691 = vadd.xlane.f32.xlu0 %v690_v48 }
 0x379   : > { %v700_v52 = vsel %vm502_vm9, %v696_v51, 0.0 }
 0x37c   : > { %698 = vadd.xlane.f32.xlu0 %v697_v50 }
 0x380   : > { %701 = vadd.xlane.f32.xlu0 %v700_v52 }
 0x403   : > { %v689_v53 = vpop.xlane.xlu1 %688 }
 0x404   : > { %v693_v55 = vmul.f32 0.03125, %v689_v53 }
 0x405   : > { %v692_v54 = vpop.xlane.xlu0 %691 }
 0x406   : > { %v705_v57 = vmul.f32 %v693_v55, %v693_v55  ;;  %v694_v58 = vmul.f32 0.03125, %v692_v54  ;;  %v709_v7 = vsub.f32 %v681_v42, %v693_v55 }
 0x408   : > { %v706_v62 = vmul.f32 %v694_v58, %v694_v58  ;;  %v710_v12 = vsub.f32 %v684_v45, %v694_v58 }
 0x409   : > { %v699_v56 = vpop.xlane.xlu0 %698 }
 0x40a   : > { %v703_v59 = vmul.f32 0.03125, %v699_v56 }
 0x40c   : > { %v707_v60 = vsub.f32 %v703_v59, %v705_v57 }
 0x40d   : > { %v702_v61 = vpop.xlane.xlu0 %701 }
 0x40e   : > { %v711_v63 = vadd.f32 1e-05, %v707_v60  ;;  %v704_v2 = vmul.f32 0.03125, %v702_v61 }
 0x410   : > { %978 = vrsqrt.f32 %v711_v63  ;;  %v708_v4 = vsub.f32 %v704_v2, %v706_v62 }
 0x412   : > { %v712_v6 = vadd.f32 1e-05, %v708_v4 }
 0x414   : > { %980 = vrsqrt.f32 %v712_v6 }
 0x41a   : > { %v979_v8 = vpop.eup %978 }
 0x41b   : > { %v715_v10 = vmul.f32 %v979_v8, %v709_v7 }
 0x41d   : > { %v723_v13 = vmul.f32 %v860_v9, %v715_v10 }
 0x41e   : > { %v981_v14 = vpop.eup %980 }
 0x41f   : > { %v731_v15 = vadd.f32 %v861_v11, %v723_v13  ;;  %v716_v16 = vmul.f32 %v981_v14, %v710_v12 }
 0x421   : > { %v733_v18 = vmax.f32 %v731_v15, 0.0  ;;  %v724_v19 = vmul.f32 %v860_v9, %v716_v16 }
 0x423   : > { %v742_v20 = vmul.f32 %v862_v17, %v733_v18  ;;  %v732_v21 = vadd.f32 %v861_v11, %v724_v19 }
 0x425   : > { %v744_v22 = vsel %vm502_vm9, %v742_v20, 0.0  ;;  %v734_v23 = vmax.f32 %v732_v21, 0.0 }
 0x426   : > { %745 = vadd.xlane.f32.xlu0 %v744_v22 }
 0x427   : > { %v743_v24 = vmul.f32 %v862_v17, %v734_v23 }
 0x429   : > { %v747_v1 = vsel %vm502_vm9, %v743_v24, 0.0 }
 0x42a   : > { %748 = vadd.xlane.f32.xlu0 %v747_v1 }
 0x4b3   : > { %v746_v28 = vpop.xlane.xlu0 %745 }
 0x4b4   : > { %v752_v30 = vadd.f32 %v751_v27, %v746_v28 }
 0x4b6   : > { %v761_v34 = vrot.slane %v752_v30, %v760_v29 }
 0x4b7   : > { %v749_v32 = vpop.xlane.xlu0 %748 }
 0x4b8   : > { %v753_v33 = vadd.f32 %v751_v27, %v749_v32 }
 0x4ba   : > { %v766_v35 = vrot.slane %v753_v33, %v765_v31 }
 0x4bc   : > { %v768_v0 = vsel %vm767_vm12, %v766_v35, %v761_v34 }
 0x4bd   : > { %771 = vst.msk [vmem:[%s379_s25] sm:$0x1] %vm770_vm13, %v768_v0 }
 0x4be   : > { %995 = shalt.err (!%p992_p3)
}
 0x4bf   : > { %s996_s18 = scalar_lea.hbm %s1278_s13, 16  ;;  %s1000_s30 = scalar_lea.hbm %s1331_s11, 32 }
 0x4c0   : > { %p997_p4 = scmp.ne.s32.totalorder %s1278_s13, %s996_s18  ;;  %p1001_p9 = scmp.lt.u32.totalorder %s1278_s13, %s1331_s11 }
 0x4c1   : > { %p1002_p10 = scmp.lt.u32.totalorder %s1000_s30, %s996_s18  ;;  %p1004_p12 = scmp.lt.u32.totalorder %s996_s18, %s1278_s13 }
 0x4c2   : > { %p998_p7 = pnand %p997_p4, %p1154_p5 }
 0x4c3   : > { %p1003_p11 = por %p1002_p10, %p1001_p9 }
 0x4c4   : > { %p999_p8 = pneg %p998_p7 }
 0x4c5   : > { %p1005_p13 = por %p1004_p12, %p1003_p11 }
 0x4c7   : > { %p1006_p0 = pnand %p1005_p13, %p999_p8 }
 0x4c9   : > { %1009 = shalt.err (!%p1006_p0)
}
 0x4ca   : > { %901 = dma.vmem_to_hbm [thread:$0]  (%p1154_p5), %s1280_s26, 16, %s1278_s13, %s773_s14  }
 0x4cb PF: > { %p907_p1 = scmp.ge.s32.totalorder %s1044_s22, 2  ;;  %s797_s10 = sand.u32 1, %s1032_s19  }
 0x4cc   : > { %s798_s16 = scalar_lea.sflag [#allocation4], %s797_s10 }
 0x4cd   : > { %p904_p2 = pnand %p907_p1, %p1158_p6 }
 0x4cf   : > { %1027 = dma.done.wait (!%p904_p2), %s798_s16, 16  }
 0x4d0   : > { %1029 = vsyncadd (!%p904_p2), %s798_s16, 4294967280  ;;  %p22_p3 = scmp.ge.s32.totalorder %s1141_s24, 4   ;;  %s1334_s19 = smov %s1036_s20 }
 0x4d1   : > { %s1335_s20 = smov %s1040_s21  ;;  %s1336_s21 = smov %s1152_s27 }
 0x4d2   : > { %s1337_s22 = smov %s1141_s24  ;;  %24 = sbr.rel (!%p22_p3) target bundleno = 5 (0x5), region = 99 }
 0x4d9   :  { %802 = vsyncpa [#allocation4], 1 }
 0x4da   :  { %804 = vsyncpa [#allocation4 + $0x1], 1 }

</bundles_post_ra>
